<compile_context>
chip_gen: v6e
topology: v6e:2x2x1
jax: 0.10.0
libtpu: 0.0.40
codegen_flags: <defaults>
</compile_context>

<pallas_src>
import jax
import jax.numpy as jnp
from jax import lax
from jax.experimental import pallas as pl
from jax.experimental.pallas import tpu as pltpu


def _round_up(x, m):
    return (x + m - 1) // m * m


def _pick_tile(n_pad, fits=lambda t: True):
    """Largest of {512, 256, 128} dividing n_pad that satisfies `fits`."""
    for cand in (512, 256, 128):
        if n_pad % cand == 0 and fits(cand):
            return cand
    return 128


# --------------------------------------------------------------------------
# Kernel 1: fused Q/K/V projection (once per row, grid = (B, N_pad / TR))
# --------------------------------------------------------------------------
def qkv_proj_kernel(x_ref, w_ref, bv_ref, q_ref, k_ref, v_ref):
    """x_ref:(TR,D) bf16; w_ref:(D,3D) bf16 = [Wq^T*scale | Wk^T | Wv^T];
    bv_ref:(1,D) f32; q/k/v_ref:(TR,D) bf16."""
    d = q_ref.shape[-1]
    qkv = jnp.dot(x_ref[...], w_ref[...],
                  preferred_element_type=jnp.float32)          # (TR, 3D) f32
    q_ref[...] = qkv[:, :d].astype(jnp.bfloat16)
    k_ref[...] = qkv[:, d:2 * d].astype(jnp.bfloat16)
    v_ref[...] = (qkv[:, 2 * d:] + bv_ref[...]).astype(jnp.bfloat16)


# --------------------------------------------------------------------------
# Kernel 2: masked attention (grid = (B, N_pad / TQ))
# --------------------------------------------------------------------------
def ssa_attn_kernel(q_ref, k_ref, v_ref, mask_ref, out_ref, attn_ref):
    """q_ref:(TQ,D) bf16; k_ref/v_ref:(N_pad,D) bf16; mask_ref:(TQ,N_pad) int8;
    out_ref:(TQ,D) f32; attn_ref:(TQ,N_pad) f32."""
    # Scores: contract last dims of q and k directly (no k^T materialized).
    s = lax.dot_general(q_ref[...], k_ref[...],
                        dimension_numbers=(((1,), (1,)), ((), ())),
                        preferred_element_type=jnp.float32)     # (TQ, N_pad)

    # Masked softmax in f32.  (Reference's `attn * mask` before the fill is a
    # no-op: kept entries are x1, dropped entries are overwritten by -1e10.)
    s = jnp.where(mask_ref[...] != 0, s, jnp.float32(-1e10))
    s = s - jnp.max(s, axis=-1, keepdims=True)
    p = jnp.exp(s)
    p = p * pl.reciprocal(jnp.sum(p, axis=-1, keepdims=True), approx=False)

    attn_ref[...] = p
    out_ref[...] = jnp.dot(p.astype(jnp.bfloat16), v_ref[...],
                           preferred_element_type=jnp.float32)  # (TQ, D)


# --------------------------------------------------------------------------
# Wrapper
# --------------------------------------------------------------------------
def ssa_forward(x, wq, wk, wv, bv, edge):
    """x:(B,N,D) f32; wq/wk/wv:(D,D) PyTorch-style (out,in); bv:(D,);
    edge:(2,E) int32 indices into the (N,N) adjacency. Returns (out, attn)."""
    B, N, D = x.shape
    n_pad = _round_up(N, 128)

    # Glue: dense 0/1 adjacency built directly as int8 (no f32 N^2 scatter).
    mask = jnp.zeros((n_pad, n_pad), jnp.int8).at[edge[0], edge[1]].set(1)

    # Weights: transpose to (in, out), fold softmax scale into Wq, fuse Q|K|V.
    scale = jnp.float32(float(D) ** -0.5)
    w_qkv = jnp.concatenate([wq.T * scale, wk.T, wv.T], axis=1
                            ).astype(jnp.bfloat16)              # (D, 3D)
    bv2 = bv.reshape(1, D).astype(jnp.float32)

    x_p = jnp.pad(x, ((0, 0), (0, n_pad - N), (0, 0))).astype(jnp.bfloat16)

    # ---- projection kernel (once per row) --------------------------------
    tr = _pick_tile(n_pad)
    q_p, k_p, v_p = pl.pallas_call(
        qkv_proj_kernel,
        out_shape=tuple(jax.ShapeDtypeStruct((B, n_pad, D), jnp.bfloat16)
                        for _ in range(3)),
        grid_spec=pltpu.PrefetchScalarGridSpec(
            num_scalar_prefetch=0,
            grid=(B, n_pad // tr),
            in_specs=[
                pl.BlockSpec((None, tr, D), lambda b, r: (b, r, 0)),   # x tile
                pl.BlockSpec((D, 3 * D), lambda b, r: (0, 0)),         # fused W
                pl.BlockSpec((1, D), lambda b, r: (0, 0)),             # v bias
            ],
            out_specs=[pl.BlockSpec((None, tr, D), lambda b, r: (b, r, 0))] * 3,
        ),
        compiler_params=pltpu.CompilerParams(
            dimension_semantics=("parallel", "parallel")),
    )(x_p, w_qkv, bv2)

    # ---- attention kernel: budget-driven TQ + explicit VMEM limit --------
    def attn_vmem_bytes(tq):
        return (2 * tq * n_pad * 4        # attn output tile (f32), double-buffered
                + 2 * tq * n_pad * 1      # mask tile (int8)
                + 2 * tq * D * (2 + 4)    # q in (bf16) + out (f32) tiles
                + 4 * n_pad * D * 2       # K + V resident blocks (bf16)
                + 2 * tq * n_pad * 4)     # in-kernel s / p f32 temporaries

    budget = 48 << 20                     # comfortable within v7x's 64 MiB/TC
    tq = _pick_tile(n_pad, fits=lambda t: attn_vmem_bytes(t) <= budget)
    vmem_limit = int(min(max(attn_vmem_bytes(tq) * 5 // 4, 32 << 20), 112 << 20))

    out_p, attn_p = pl.pallas_call(
        ssa_attn_kernel,
        out_shape=(
            jax.ShapeDtypeStruct((B, n_pad, D), jnp.float32),      # attn @ v
            jax.ShapeDtypeStruct((B, n_pad, n_pad), jnp.float32),  # attention
        ),
        grid_spec=pltpu.PrefetchScalarGridSpec(
            num_scalar_prefetch=0,
            grid=(B, n_pad // tq),
            in_specs=[
                pl.BlockSpec((None, tq, D), lambda b, i: (b, i, 0)),      # q tile
                pl.BlockSpec((None, n_pad, D), lambda b, i: (b, 0, 0)),   # K[b]
                pl.BlockSpec((None, n_pad, D), lambda b, i: (b, 0, 0)),   # V[b]
                pl.BlockSpec((tq, n_pad), lambda b, i: (i, 0)),           # mask rows
            ],
            out_specs=[
                pl.BlockSpec((None, tq, D), lambda b, i: (b, i, 0)),
                pl.BlockSpec((None, tq, n_pad), lambda b, i: (b, i, 0)),
            ],
        ),
        compiler_params=pltpu.CompilerParams(
            dimension_semantics=("parallel", "parallel"),
            vmem_limit_bytes=vmem_limit),
    )(q_p, k_p, v_p, mask)

    # Strip padding back to the caller-visible shapes.
    return out_p[:, :N, :D], attn_p[:, :N, :N]


# --------------------------------------------------------------------------
# Pure-JAX reference (mirrors the PyTorch module) for a tolerance check.
# --------------------------------------------------------------------------
def ssa_reference(x, wq, wk, wv, bv, edge):
    B, N, D = x.shape
    q = x @ wq.T
    k = x @ wk.T
    v = x @ wv.T + bv
    attn = jnp.einsum('bnd,bmd->bnm', q, k) * (float(D) ** -0.5)
    graph = jnp.zeros((N, N), jnp.float32).at[edge[0], edge[1]].add(1.0)
    keep = graph >= 1.0
    attn = jnp.where(keep[None], attn, jnp.float32(-1e10))
    attn = jax.nn.softmax(attn, axis=-1)
    out = jnp.einsum('bnm,bmd->bnd', attn, v)
    return out, attn


if __name__ == "__main__":
    B, N, D = 2, 16, 32
    key = jax.random.PRNGKey(0)
    k1, k2, k3, k4, k5, k6, k7 = jax.random.split(key, 7)

    # Deterministic synthetic parameters (PyTorch Linear shapes: (out, in)).
    x = jax.random.normal(k1, (B, N, D), jnp.float32)
    wq = jax.random.normal(k2, (D, D), jnp.float32) * (1.0 / D ** 0.5)
    wk = jax.random.normal(k3, (D, D), jnp.float32) * (1.0 / D ** 0.5)
    wv = jax.random.normal(k4, (D, D), jnp.float32) * (1.0 / D ** 0.5)
    bv = jax.random.normal(k5, (D,), jnp.float32) * 0.01

    # Deterministic edge list (2, E) — self loops keep every row non-empty.
    E = 48
    src = jax.random.randint(k6, (E,), 0, N, dtype=jnp.int32)
    dst = jax.random.randint(k7, (E,), 0, N, dtype=jnp.int32)
    self_loops = jnp.arange(N, dtype=jnp.int32)
    edge = jnp.stack(
        [jnp.concatenate([src, self_loops]),
         jnp.concatenate([dst, self_loops])], axis=0)

    v_out, attn_out = jax.jit(ssa_forward)(x, wq, wk, wv, bv, edge)
    jax.block_until_ready((v_out, attn_out))

    assert v_out.shape == (B, N, D)
    assert attn_out.shape == (B, N, N)
    assert bool(jnp.all(jnp.isfinite(v_out))) and bool(jnp.all(jnp.isfinite(attn_out)))

    # bf16 matmul inputs => tolerance check, not exact match.
    v_ref, attn_ref = ssa_reference(x, wq, wk, wv, bv, edge)
    assert bool(jnp.allclose(attn_out, attn_ref, atol=5e-2, rtol=5e-2))
    assert bool(jnp.allclose(v_out, v_ref, atol=5e-2, rtol=5e-2))

    print("KERNEL_OK")
</pallas_src>

<mosaic_0001>
module attributes {stable_mosaic.version = 11 : i64} {
  func.func @qkv_proj_kernel(%arg0: i32, %arg1: i32, %arg2: memref<1x128x32xbf16, #tpu.memory_space<vmem>>, %arg3: memref<32x96xbf16, #tpu.memory_space<vmem>>, %arg4: memref<1x32xf32, #tpu.memory_space<vmem>>, %arg5: memref<1x128x32xbf16, #tpu.memory_space<vmem>>, %arg6: memref<1x128x32xbf16, #tpu.memory_space<vmem>>, %arg7: memref<1x128x32xbf16, #tpu.memory_space<vmem>>) attributes {dimension_semantics = [#tpu.dimension_semantics<parallel>, #tpu.dimension_semantics<parallel>], iteration_bounds = array<i64: 2, 1>, scalar_prefetch = 0 : i64, scratch_operands = 0 : i64, tpu.core_type = #tpu.core_type<tc>, window_params = [{transform_indices = @transform_0, window_bounds = array<i64: 1, 128, 32>}, {pipeline_mode = #tpu.pipeline_mode<synchronous>, transform_indices = @transform_1, window_bounds = array<i64: 32, 96>}, {pipeline_mode = #tpu.pipeline_mode<synchronous>, transform_indices = @transform_2, window_bounds = array<i64: 1, 32>}, {transform_indices = @transform_3, window_bounds = array<i64: 1, 128, 32>}, {transform_indices = @transform_4, window_bounds = array<i64: 1, 128, 32>}, {transform_indices = @transform_5, window_bounds = array<i64: 1, 128, 32>}]} {
    %c0 = arith.constant 0 : index
    %c0_0 = arith.constant 0 : index
    %c0_1 = arith.constant 0 : index
    %0 = vector.load %arg2[%c0, %c0_0, %c0_1] : memref<1x128x32xbf16, #tpu.memory_space<vmem>>, vector<1x128x32xbf16>
    %1 = vector.shape_cast %0 : vector<1x128x32xbf16> to vector<128x32xbf16>
    %c0_2 = arith.constant 0 : index
    %c0_3 = arith.constant 0 : index
    %2 = vector.load %arg3[%c0_2, %c0_3] : memref<32x96xbf16, #tpu.memory_space<vmem>>, vector<32x96xbf16>
    %cst = arith.constant dense<0.000000e+00> : vector<128x96xf32>
    %3 = tpu.matmul %1, %2, %cst {dimension_numbers = #tpu.dot_dimension_numbers<[1], [0], [0], [1], [0, 0, 1, 1], [], []>} : vector<128x32xbf16>, vector<32x96xbf16>, vector<128x96xf32> -> vector<128x96xf32>
    %4 = vector.extract_strided_slice %3 {offsets = [0, 0], sizes = [128, 32], strides = [1, 1]} : vector<128x96xf32> to vector<128x32xf32>
    %5 = arith.truncf %4 : vector<128x32xf32> to vector<128x32xbf16>
    %c0_4 = arith.constant 0 : index
    %c0_5 = arith.constant 0 : index
    %c0_6 = arith.constant 0 : index
    %6 = vector.load %arg5[%c0_4, %c0_5, %c0_6] : memref<1x128x32xbf16, #tpu.memory_space<vmem>>, vector<1x128x32xbf16>
    %7 = vector.shape_cast %6 : vector<1x128x32xbf16> to vector<128x32xbf16>
    %8 = vector.shape_cast %5 : vector<128x32xbf16> to vector<1x128x32xbf16>
    tpu.vector_store %arg5[%c0_4, %c0_5, %c0_6], %8 {strides = array<i32>} : memref<1x128x32xbf16, #tpu.memory_space<vmem>>, vector<1x128x32xbf16>,
    %9 = vector.extract_strided_slice %3 {offsets = [0, 32], sizes = [128, 32], strides = [1, 1]} : vector<128x96xf32> to vector<128x32xf32>
    %10 = arith.truncf %9 : vector<128x32xf32> to vector<128x32xbf16>
    %c0_7 = arith.constant 0 : index
    %c0_8 = arith.constant 0 : index
    %c0_9 = arith.constant 0 : index
    %11 = vector.load %arg6[%c0_7, %c0_8, %c0_9] : memref<1x128x32xbf16, #tpu.memory_space<vmem>>, vector<1x128x32xbf16>
    %12 = vector.shape_cast %11 : vector<1x128x32xbf16> to vector<128x32xbf16>
    %13 = vector.shape_cast %10 : vector<128x32xbf16> to vector<1x128x32xbf16>
    tpu.vector_store %arg6[%c0_7, %c0_8, %c0_9], %13 {strides = array<i32>} : memref<1x128x32xbf16, #tpu.memory_space<vmem>>, vector<1x128x32xbf16>,
    %14 = vector.extract_strided_slice %3 {offsets = [0, 64], sizes = [128, 32], strides = [1, 1]} : vector<128x96xf32> to vector<128x32xf32>
    %c0_10 = arith.constant 0 : index
    %c0_11 = arith.constant 0 : index
    %15 = vector.load %arg4[%c0_10, %c0_11] : memref<1x32xf32, #tpu.memory_space<vmem>>, vector<1x32xf32>
    %16 = vector.broadcast %15 : vector<1x32xf32> to vector<128x32xf32>
    %17 = arith.addf %14, %16 : vector<128x32xf32>
    %18 = arith.truncf %17 : vector<128x32xf32> to vector<128x32xbf16>
    %c0_12 = arith.constant 0 : index
    %c0_13 = arith.constant 0 : index
    %c0_14 = arith.constant 0 : index
    %19 = vector.load %arg7[%c0_12, %c0_13, %c0_14] : memref<1x128x32xbf16, #tpu.memory_space<vmem>>, vector<1x128x32xbf16>
    %20 = vector.shape_cast %19 : vector<1x128x32xbf16> to vector<128x32xbf16>
    %21 = vector.shape_cast %18 : vector<128x32xbf16> to vector<1x128x32xbf16>
    tpu.vector_store %arg7[%c0_12, %c0_13, %c0_14], %21 {strides = array<i32>} : memref<1x128x32xbf16, #tpu.memory_space<vmem>>, vector<1x128x32xbf16>,
    return
  }
  func.func @transform_0(%arg0: i32, %arg1: i32) -> (i32, i32, i32) {
    %c0_i32 = arith.constant 0 : i32
    %c0_i32_0 = arith.constant 0 : i32
    return %arg0, %arg1, %c0_i32 : i32, i32, i32
  }
  func.func @transform_1(%arg0: i32, %arg1: i32) -> (i32, i32) {
    %c0_i32 = arith.constant 0 : i32
    %c0_i32_0 = arith.constant 0 : i32
    %c0_i32_1 = arith.constant 0 : i32
    return %c0_i32, %c0_i32_0 : i32, i32
  }
  func.func @transform_2(%arg0: i32, %arg1: i32) -> (i32, i32) {
    %c0_i32 = arith.constant 0 : i32
    %c0_i32_0 = arith.constant 0 : i32
    %c0_i32_1 = arith.constant 0 : i32
    return %c0_i32, %c0_i32_0 : i32, i32
  }
  func.func @transform_3(%arg0: i32, %arg1: i32) -> (i32, i32, i32) {
    %c0_i32 = arith.constant 0 : i32
    %c0_i32_0 = arith.constant 0 : i32
    return %arg0, %arg1, %c0_i32 : i32, i32, i32
  }
  func.func @transform_4(%arg0: i32, %arg1: i32) -> (i32, i32, i32) {
    %c0_i32 = arith.constant 0 : i32
    %c0_i32_0 = arith.constant 0 : i32
    return %arg0, %arg1, %c0_i32 : i32, i32, i32
  }
  func.func @transform_5(%arg0: i32, %arg1: i32) -> (i32, i32, i32) {
    %c0_i32 = arith.constant 0 : i32
    %c0_i32_0 = arith.constant 0 : i32
    return %arg0, %arg1, %c0_i32 : i32, i32, i32
  }
}

module attributes {stable_mosaic.version = 11 : i64} {
  func.func @ssa_attn_kernel(%arg0: i32, %arg1: i32, %arg2: memref<1x128x32xbf16, #tpu.memory_space<vmem>>, %arg3: memref<1x128x32xbf16, #tpu.memory_space<vmem>>, %arg4: memref<1x128x32xbf16, #tpu.memory_space<vmem>>, %arg5: memref<128x128xi8, #tpu.memory_space<vmem>>, %arg6: memref<1x128x32xf32, #tpu.memory_space<vmem>>, %arg7: memref<1x128x128xf32, #tpu.memory_space<vmem>>) attributes {dimension_semantics = [#tpu.dimension_semantics<parallel>, #tpu.dimension_semantics<parallel>], iteration_bounds = array<i64: 2, 1>, scalar_prefetch = 0 : i64, scratch_operands = 0 : i64, tpu.core_type = #tpu.core_type<tc>, window_params = [{transform_indices = @transform_0, window_bounds = array<i64: 1, 128, 32>}, {transform_indices = @transform_1, window_bounds = array<i64: 1, 128, 32>}, {transform_indices = @transform_2, window_bounds = array<i64: 1, 128, 32>}, {transform_indices = @transform_3, window_bounds = array<i64: 128, 128>}, {transform_indices = @transform_4, window_bounds = array<i64: 1, 128, 32>}, {transform_indices = @transform_5, window_bounds = array<i64: 1, 128, 128>}]} {
    %c0 = arith.constant 0 : index
    %c0_0 = arith.constant 0 : index
    %c0_1 = arith.constant 0 : index
    %0 = vector.load %arg2[%c0, %c0_0, %c0_1] : memref<1x128x32xbf16, #tpu.memory_space<vmem>>, vector<1x128x32xbf16>
    %1 = vector.shape_cast %0 : vector<1x128x32xbf16> to vector<128x32xbf16>
    %c0_2 = arith.constant 0 : index
    %c0_3 = arith.constant 0 : index
    %c0_4 = arith.constant 0 : index
    %2 = vector.load %arg3[%c0_2, %c0_3, %c0_4] : memref<1x128x32xbf16, #tpu.memory_space<vmem>>, vector<1x128x32xbf16>
    %3 = vector.shape_cast %2 : vector<1x128x32xbf16> to vector<128x32xbf16>
    %cst = arith.constant dense<0.000000e+00> : vector<128x128xf32>
    %4 = tpu.matmul %1, %3, %cst {dimension_numbers = #tpu.dot_dimension_numbers<[1], [1], [0], [0], [0, 0, 1, 0], [], []>} : vector<128x32xbf16>, vector<128x32xbf16>, vector<128x128xf32> -> vector<128x128xf32>
    %c0_5 = arith.constant 0 : index
    %c0_6 = arith.constant 0 : index
    %5 = vector.load %arg5[%c0_5, %c0_6] : memref<128x128xi8, #tpu.memory_space<vmem>>, vector<128x128xi8>
    %c0_i8 = arith.constant 0 : i8
    %6 = vector.broadcast %c0_i8 : i8 to vector<128x128xi8>
    %7 = arith.cmpi ne, %5, %6 : vector<128x128xi8>
    %cst_7 = arith.constant -1.000000e+10 : f32
    %8 = vector.broadcast %cst_7 : f32 to vector<128x128xf32>
    %9 = arith.select %7, %4, %8 : vector<128x128xi1>, vector<128x128xf32>
    %cst_8 = arith.constant dense<0xFF800000> : vector<128xf32>
    %10 = vector.multi_reduction <maximumf>, %9, %cst_8 [1] : vector<128x128xf32> to vector<128xf32>
    %11 = vector.shape_cast %10 : vector<128xf32> to vector<128x1xf32>
    %12 = vector.broadcast %11 : vector<128x1xf32> to vector<128x128xf32>
    %13 = arith.subf %9, %12 : vector<128x128xf32>
    %14 = math.exp %13 : vector<128x128xf32>
    %cst_9 = arith.constant dense<0.000000e+00> : vector<128xf32>
    %15 = vector.multi_reduction <add>, %14, %cst_9 [1] : vector<128x128xf32> to vector<128xf32>
    %16 = vector.shape_cast %15 : vector<128xf32> to vector<128x1xf32>
    %17 = tpu.reciprocal %16 : vector<128x1xf32> -> vector<128x1xf32>
    %18 = vector.broadcast %17 : vector<128x1xf32> to vector<128x128xf32>
    %19 = arith.mulf %14, %18 : vector<128x128xf32>
    %c0_10 = arith.constant 0 : index
    %c0_11 = arith.constant 0 : index
    %c0_12 = arith.constant 0 : index
    %20 = vector.load %arg7[%c0_10, %c0_11, %c0_12] : memref<1x128x128xf32, #tpu.memory_space<vmem>>, vector<1x128x128xf32>
    %21 = vector.shape_cast %20 : vector<1x128x128xf32> to vector<128x128xf32>
    %22 = vector.shape_cast %19 : vector<128x128xf32> to vector<1x128x128xf32>
    tpu.vector_store %arg7[%c0_10, %c0_11, %c0_12], %22 {strides = array<i32>} : memref<1x128x128xf32, #tpu.memory_space<vmem>>, vector<1x128x128xf32>,
    %23 = arith.truncf %19 : vector<128x128xf32> to vector<128x128xbf16>
    %c0_13 = arith.constant 0 : index
    %c0_14 = arith.constant 0 : index
    %c0_15 = arith.constant 0 : index
    %24 = vector.load %arg4[%c0_13, %c0_14, %c0_15] : memref<1x128x32xbf16, #tpu.memory_space<vmem>>, vector<1x128x32xbf16>
    %25 = vector.shape_cast %24 : vector<1x128x32xbf16> to vector<128x32xbf16>
    %cst_16 = arith.constant dense<0.000000e+00> : vector<128x32xf32>
    %26 = tpu.matmul %23, %25, %cst_16 {dimension_numbers = #tpu.dot_dimension_numbers<[1], [0], [0], [1], [0, 0, 1, 1], [], []>} : vector<128x128xbf16>, vector<128x32xbf16>, vector<128x32xf32> -> vector<128x32xf32>
    %c0_17 = arith.constant 0 : index
    %c0_18 = arith.constant 0 : index
    %c0_19 = arith.constant 0 : index
    %27 = vector.load %arg6[%c0_17, %c0_18, %c0_19] : memref<1x128x32xf32, #tpu.memory_space<vmem>>, vector<1x128x32xf32>
    %28 = vector.shape_cast %27 : vector<1x128x32xf32> to vector<128x32xf32>
    %29 = vector.shape_cast %26 : vector<128x32xf32> to vector<1x128x32xf32>
    tpu.vector_store %arg6[%c0_17, %c0_18, %c0_19], %29 {strides = array<i32>} : memref<1x128x32xf32, #tpu.memory_space<vmem>>, vector<1x128x32xf32>,
    return
  }
  func.func @transform_0(%arg0: i32, %arg1: i32) -> (i32, i32, i32) {
    %c0_i32 = arith.constant 0 : i32
    %c0_i32_0 = arith.constant 0 : i32
    return %arg0, %arg1, %c0_i32 : i32, i32, i32
  }
  func.func @transform_1(%arg0: i32, %arg1: i32) -> (i32, i32, i32) {
    %c0_i32 = arith.constant 0 : i32
    %c0_i32_0 = arith.constant 0 : i32
    %c0_i32_1 = arith.constant 0 : i32
    return %arg0, %c0_i32, %c0_i32_0 : i32, i32, i32
  }
  func.func @transform_2(%arg0: i32, %arg1: i32) -> (i32, i32, i32) {
    %c0_i32 = arith.constant 0 : i32
    %c0_i32_0 = arith.constant 0 : i32
    %c0_i32_1 = arith.constant 0 : i32
    return %arg0, %c0_i32, %c0_i32_0 : i32, i32, i32
  }
  func.func @transform_3(%arg0: i32, %arg1: i32) -> (i32, i32) {
    %c0_i32 = arith.constant 0 : i32
    %c0_i32_0 = arith.constant 0 : i32
    return %arg1, %c0_i32 : i32, i32
  }
  func.func @transform_4(%arg0: i32, %arg1: i32) -> (i32, i32, i32) {
    %c0_i32 = arith.constant 0 : i32
    %c0_i32_0 = arith.constant 0 : i32
    return %arg0, %arg1, %c0_i32 : i32, i32, i32
  }
  func.func @transform_5(%arg0: i32, %arg1: i32) -> (i32, i32, i32) {
    %c0_i32 = arith.constant 0 : i32
    %c0_i32_0 = arith.constant 0 : i32
    return %arg0, %arg1, %c0_i32 : i32, i32, i32
  }
}

</mosaic_0001>

<bundles_post_ra>
// kernel: ssa_forward.2
= control target key start
LH: loop header
LB: loop body
LE: loop exit
PB: predicated region body
PF: predicated region fallthrough
CT: control target
= control target key end

     0   :  { %s1203_s18 = smov 0   ;;  %s1205_s19 = smov 0   ;;  %s1423_s0 = inlined_call_operand.vmem [shape: bf16[2,128,32], index: 0, kind: input, shape index: {}]   ;;  %s1424_s1 = inlined_call_operand.vmem [shape: bf16[32,96], index: 1, kind: input, shape index: {}]   ;;  %s1425_s2 = inlined_call_operand.vmem [shape: f32[1,32], index: 2, kind: input, shape index: {}]   ;;  %s1426_s3 = inlined_call_operand.vmem [shape: bf16[2,128,32], index: 3, kind: output, shape index: {0}]   ;;  %s1427_s4 = inlined_call_operand.vmem [shape: bf16[2,128,32], index: 4, kind: output, shape index: {1}]   ;;  %s1428_s5 = inlined_call_operand.vmem [shape: bf16[2,128,32], index: 5, kind: output, shape index: {2}]  }
   0x1   :  { %s1207_s20 = smov 0  }
   0x2 LB: > { %s28_s21 = sadd.s32 1, %s1165_s19  ;;  %p979_p0 = scmp.ge.s32.totalorder %s1169_s20, 1  ;;  %s1169_s20 = sphi %s1207_s20, %s16_s20   ;;  %s1165_s19 = sphi %s1205_s19, %s1430_s19   ;;  %s1161_s18 = sphi %s1203_s18, %s1429_s18  }
   0x3   : > { %p30_p1 = scmp.ge.s32.totalorder %s28_s21, 2  ;;  %p217_p2 = scmp.lt.s32.totalorder %s1169_s20, 3 }
   0x5   : > { %s1432_s21 = smov (%p30_p1, %s28_s21), 0  ;;  %p218_p3 = pnand %p979_p0, %p217_p2 }
   0x6   : > { %p272_p4 = scmp.lt.s32.totalorder (!%p218_p3), %s1161_s18, 1  ;;  %s1171_s7 = smov (!%p218_p3), 64  }
   0x7   : > { %221 = sbr.rel (%p218_p3) target bundleno = 394 (0x18a), region = 32  ;;  %s1172_s11 = smov (!%p218_p3), 96  }
   0xc   : > { %v1137_v0 = vld [vmem:[%s1424_s1 + $0x8] sm:$0xff]   ;;  %v1138_v1 = vld [vmem:[%s1424_s1] sm:$0xff]   ;;  %s1434_s18 = smov (!%p272_p4, %s1161_s18), 1  ;;  %vm384_vm0 = vcmask 261120   ;;  %vm570_vm1 = vcmask 257024  }
   0xd   : > { %1087 = vmatprep.subr.bf16.mxu0 %v1137_v0  ;;  %1107 = vmatprep.subr.bf16.mxu1 %v1137_v0  ;;  %v1022_v2 = vld [vmem:[%s1425_s2] ss:$0 sm:$0xff]  ;;  %s1230_s28 = sshll.u32 %s1434_s18, 6 }
   0xe   : > { %1088 = vmatpush3.bf16.msra.mxu0 %v1137_v0  ;;  %1109 = vmatpush3.bf16.msra.mxu1 %v1137_v0  ;;  %s279_s6 = scalar_lea.vmem %s1423_s0, %s1230_s28  ;;  %s1249_s10 = scalar_lea.vmem %s1426_s3, %s1230_s28 }
   0xf   : > { %1089 = vmatprep.subr.bf16.mxu0 %v1138_v1  ;;  %1108 = vmatprep.subr.bf16.mxu1 %v1138_v1  ;;  %v1139_v3 = vld [vmem:[%s279_s6] sm:$0xff]   ;;  %v1141_v5 = vld [vmem:[%s279_s6 + $0x8] sm:$0xff]   ;;  %v1143_v7 = vld [vmem:[%s279_s6 + $0x10] sm:$0xff]   ;;  %s1342_s14 = scalar_lea.vmem %s1427_s4, %s1230_s28  ;;  %s1358_s17 = scalar_lea.vmem %s1428_s5, %s1230_s28 }
  0x10   : > { %657 = vrot.lane.b32.xlu0 %v1022_v2, %s1171_s7  ;;  %v1140_v4 = vld [vmem:[%s279_s6 + $0x20] sm:$0xff]   ;;  %1091 = vmatprep.mubr.msk.bf16.mxu0 %vm384_vm0, %v1139_v3  ;;  %v1142_v6 = vld [vmem:[%s279_s6 + $0x28] sm:$0xff]   ;;  %v1144_v8 = vld [vmem:[%s279_s6 + $0x30] sm:$0xff]  }
  0x11   : > { %1099 = vmatprep.mubr.msk.bf16.mxu1 %vm384_vm0, %v1140_v4  ;;  %v1145_v9 = vld [vmem:[%s279_s6 + $0x18] sm:$0xff]  }
  0x12   : > { %1090 = vmatpush3.bf16.msra.mxu0 %v1138_v1  ;;  %1110 = vmatpush3.bf16.msra.mxu1 %v1138_v1  ;;  %v1146_v10 = vld [vmem:[%s279_s6 + $0x38] sm:$0xff]  }
  0x15   : > { %1092 = vmatmul.mubr.msk.bf16.vlgmr.msra.gmra.mxu0 %vm384_vm0, %v1141_v5  ;;  %1100 = vmatmul.mubr.msk.bf16.vlgmr.msra.gmra.mxu1 %vm384_vm0, %v1142_v6 }
  0x16   : > { %1095 = vmatprep.mubr.msk.bf16.mxu0 %vm384_vm0, %v1143_v7  ;;  %1103 = vmatprep.mubr.msk.bf16.mxu1 %vm384_vm0, %v1144_v8 }
  0x1d   : > { %1096 = vmatmul.mubr.msk.bf16.gmra.mxu0 %vm384_vm0, %v1145_v9  ;;  %1104 = vmatmul.mubr.msk.bf16.gmra.mxu1 %vm384_vm0, %v1146_v10 }
  0x82   : > { %v1259_v22 = vpop.permute.xlu0 %657 }
  0xd5   : > { %v1093_v11 = vpop.f32.mrf.mxu0  ;;  %v1101_v12 = vpop.f32.mrf.mxu1 }
  0xd6   : > { %v1047_v13 = vpack.c.bf16 %v1093_v11, %v1093_v11  ;;  %v1055_v14 = vpack.c.bf16 %v1101_v12, %v1101_v12  ;;  %v662_v29 = vadd.f32 %v1093_v11, %v1259_v22  ;;  %v670_v39 = vadd.f32 %v1101_v12, %v1259_v22 }
  0xd7   : > { %v443_v15 = vpop.f32.mrf.mxu0  ;;  %v475_v17 = vpop.f32.mrf.mxu1 }
  0xd8   : > { %v1045_v16 = vpack.c.bf16 %v443_v15, %v443_v15  ;;  %591 = vrot.lane.b32.xlu1 %v1047_v13, %s1172_s11  ;;  %573 = vst.msk [vmem:[%s1249_s10 + $0x8] sm:$0xf] %vm570_vm1, %v1047_v13  ;;  %581 = vst.msk [vmem:[%s1249_s10 + $0x28] sm:$0xf] %vm570_vm1, %v1055_v14  ;;  %v1053_v18 = vpack.c.bf16 %v475_v17, %v475_v17  ;;  %v1063_v38 = vpack.c.bf16 %v662_v29, %v662_v29 }
  0xd9   : > { %v1094_v19 = vpop.f32.mrf.mxu0  ;;  %v1102_v21 = vpop.f32.mrf.mxu1  ;;  %v1071_v48 = vpack.c.bf16 %v670_v39, %v670_v39  ;;  %v660_v49 = vadd.f32 %v1259_v22, %v443_v15  ;;  %v668_v53 = vadd.f32 %v1259_v22, %v475_v17 }
  0xda   : > { %571 = vst.msk [vmem:[%s1249_s10] sm:$0xf] %vm570_vm1, %v1045_v16  ;;  %v1048_v20 = vpack.c.bf16 %v1094_v19, %v1094_v19  ;;  %587 = vrot.lane.b32.xlu0 %v1045_v16, %s1172_s11  ;;  %579 = vst.msk [vmem:[%s1249_s10 + $0x20] sm:$0xf] %vm570_vm1, %v1053_v18  ;;  %v1056_v23 = vpack.c.bf16 %v1102_v21, %v1102_v21  ;;  %v663_v44 = vadd.f32 %v1094_v19, %v1259_v22 }
  0xdb   : > { %v446_v24 = vpop.f32.mrf.mxu0  ;;  %v478_v26 = vpop.f32.mrf.mxu1  ;;  %v671_v51 = vadd.f32 %v1102_v21, %v1259_v22  ;;  %v1061_v52 = vpack.c.bf16 %v660_v49, %v660_v49  ;;  %v1069_v56 = vpack.c.bf16 %v668_v53, %v668_v53 }
  0xdc   : > { %574 = vst.msk [vmem:[%s1249_s10 + $0xc] sm:$0xf] %vm570_vm1, %v1048_v20  ;;  %v1046_v25 = vpack.c.bf16 %v446_v24, %v446_v24  ;;  %607 = vrot.lane.b32.xlu1 %v1055_v14, %s1172_s11  ;;  %582 = vst.msk [vmem:[%s1249_s10 + $0x2c] sm:$0xf] %vm570_vm1, %v1056_v23  ;;  %v1054_v27 = vpack.c.bf16 %v478_v26, %v478_v26  ;;  %v1064_v50 = vpack.c.bf16 %v663_v44, %v663_v44 }
  0xdd   : > { %v1097_v28 = vpop.f32.mrf.mxu0  ;;  %v1271_v31 = vpop.f32.mrf.mxu1  ;;  %v1072_v54 = vpack.c.bf16 %v671_v51, %v671_v51  ;;  %v661_v55 = vadd.f32 %v1259_v22, %v446_v24  ;;  %v669_v58 = vadd.f32 %v1259_v22, %v478_v26 }
  0xde   : > { %572 = vst.msk [vmem:[%s1249_s10 + $0x4] sm:$0xf] %vm570_vm1, %v1046_v25  ;;  %v1051_v30 = vpack.c.bf16 %v1097_v28, %v1097_v28  ;;  %593 = vrot.lane.b32.xlu0 %v1048_v20, %s1172_s11  ;;  %580 = vst.msk [vmem:[%s1249_s10 + $0x24] sm:$0xf] %vm570_vm1, %v1054_v27  ;;  %v1059_v32 = vpack.c.bf16 %v1271_v31, %v1271_v31  ;;  %v666_v60 = vadd.f32 %v1097_v28, %v1259_v22 }
  0xdf   : > { %v459_v33 = vpop.f32.mrf.mxu0  ;;  %v491_v35 = vpop.f32.mrf.mxu1  ;;  %v1062_v57 = vpack.c.bf16 %v661_v55, %v661_v55  ;;  %v1070_v59 = vpack.c.bf16 %v669_v58, %v669_v58  ;;  %v674_v6 = vadd.f32 %v1271_v31, %v1259_v22 }
  0xe0   : > { %577 = vst.msk [vmem:[%s1249_s10 + $0x18] sm:$0xf] %vm570_vm1, %v1051_v30  ;;  %v1049_v34 = vpack.c.bf16 %v459_v33, %v459_v33  ;;  %603 = vrot.lane.b32.xlu1 %v1053_v18, %s1172_s11  ;;  %585 = vst.msk [vmem:[%s1249_s10 + $0x38] sm:$0xf] %vm570_vm1, %v1059_v32  ;;  %v1057_v36 = vpack.c.bf16 %v491_v35, %v491_v35  ;;  %v1067_v62 = vpack.c.bf16 %v666_v60, %v666_v60 }
  0xe1   : > { %v1098_v37 = vpop.f32.mrf.mxu0  ;;  %v1106_v41 = vpop.f32.mrf.mxu1  ;;  %v664_v63 = vadd.f32 %v1259_v22, %v459_v33  ;;  %v672_v3 = vadd.f32 %v1259_v22, %v491_v35  ;;  %v1075_v10 = vpack.c.bf16 %v674_v6, %v674_v6 }
  0xe2   : > { %575 = vst.msk [vmem:[%s1249_s10 + $0x10] sm:$0xf] %vm570_vm1, %v1049_v34  ;;  %v1052_v40 = vpack.c.bf16 %v1098_v37, %v1098_v37  ;;  %609 = vrot.lane.b32.xlu0 %v1056_v23, %s1172_s11  ;;  %583 = vst.msk [vmem:[%s1249_s10 + $0x30] sm:$0xf] %vm570_vm1, %v1057_v36  ;;  %v1060_v42 = vpack.c.bf16 %v1106_v41, %v1106_v41  ;;  %v667_v61 = vadd.f32 %v1098_v37, %v1259_v22 }
  0xe3   : > { %v462_v43 = vpop.f32.mrf.mxu0  ;;  %v494_v46 = vpop.f32.mrf.mxu1  ;;  %v1065_v2 = vpack.c.bf16 %v664_v63, %v664_v63  ;;  %v1073_v7 = vpack.c.bf16 %v672_v3, %v672_v3  ;;  %v675_v8 = vadd.f32 %v1106_v41, %v1259_v22 }
  0xe4   : > { %578 = vst.msk [vmem:[%s1249_s10 + $0x1c] sm:$0xf] %vm570_vm1, %v1052_v40  ;;  %v1050_v45 = vpack.c.bf16 %v462_v43, %v462_v43  ;;  %728 = vrot.lane.b32.xlu1 %v1063_v38, %s1171_s7  ;;  %586 = vst.msk [vmem:[%s1249_s10 + $0x3c] sm:$0xf] %vm570_vm1, %v1060_v42  ;;  %v1058_v47 = vpack.c.bf16 %v494_v46, %v494_v46  ;;  %v1068_v0 = vpack.c.bf16 %v667_v61, %v667_v61 }
  0xe5   : > { %v665_v1 = vadd.f32 %v1259_v22, %v462_v43  ;;  %v673_v5 = vadd.f32 %v1259_v22, %v494_v46  ;;  %v1076_v11 = vpack.c.bf16 %v675_v8, %v675_v8 }
  0xe6   : > { %576 = vst.msk [vmem:[%s1249_s10 + $0x14] sm:$0xf] %vm570_vm1, %v1050_v45  ;;  %605 = vrot.lane.b32.xlu0 %v1054_v27, %s1172_s11  ;;  %584 = vst.msk [vmem:[%s1249_s10 + $0x34] sm:$0xf] %vm570_vm1, %v1058_v47 }
  0xe7   : > { %v1066_v4 = vpack.c.bf16 %v665_v1, %v665_v1  ;;  %v1074_v9 = vpack.c.bf16 %v673_v5, %v673_v5 }
  0xe8   : > { %744 = vrot.lane.b32.xlu1 %v1071_v48, %s1171_s7 }
  0xea   : > { %730 = vrot.lane.b32.xlu0 %v1064_v50, %s1171_s7 }
  0xec   : > { %724 = vrot.lane.b32.xlu1 %v1061_v52, %s1171_s7 }
  0xee   : > { %746 = vrot.lane.b32.xlu0 %v1072_v54, %s1171_s7 }
  0xf0   : > { %740 = vrot.lane.b32.xlu1 %v1069_v56, %s1171_s7 }
  0xf2   : > { %726 = vrot.lane.b32.xlu0 %v1062_v57, %s1171_s7 }
  0xf4   : > { %589 = vrot.lane.b32.xlu1 %v1046_v25, %s1172_s11 }
  0xf6   : > { %742 = vrot.lane.b32.xlu0 %v1070_v59, %s1171_s7 }
  0xf8   : > { %599 = vrot.lane.b32.xlu1 %v1051_v30, %s1172_s11 }
  0xfa   : > { %601 = vrot.lane.b32.xlu0 %v1052_v40, %s1172_s11 }
  0xfc   : > { %615 = vrot.lane.b32.xlu1 %v1059_v32, %s1172_s11 }
  0xfe   : > { %617 = vrot.lane.b32.xlu0 %v1060_v42, %s1172_s11 }
 0x100   : > { %595 = vrot.lane.b32.xlu1 %v1049_v34, %s1172_s11 }
 0x102   : > { %597 = vrot.lane.b32.xlu0 %v1050_v45, %s1172_s11 }
 0x104   : > { %611 = vrot.lane.b32.xlu1 %v1057_v36, %s1172_s11 }
 0x106   : > { %613 = vrot.lane.b32.xlu0 %v1058_v47, %s1172_s11 }
 0x108   : > { %736 = vrot.lane.b32.xlu1 %v1067_v62, %s1171_s7 }
 0x10a   : > { %738 = vrot.lane.b32.xlu0 %v1068_v0, %s1171_s7 }
 0x10c   : > { %732 = vrot.lane.b32.xlu1 %v1065_v2, %s1171_s7 }
 0x10e   : > { %734 = vrot.lane.b32.xlu0 %v1066_v4, %s1171_s7 }
 0x110   : > { %748 = vrot.lane.b32.xlu1 %v1073_v7, %s1171_s7 }
 0x112   : > { %750 = vrot.lane.b32.xlu0 %v1074_v9, %s1171_s7 }
 0x114   : > { %752 = vrot.lane.b32.xlu1 %v1075_v10, %s1171_s7 }
 0x116   : > { %754 = vrot.lane.b32.xlu0 %v1076_v11, %s1171_s7 }
 0x14a   : > { %v592_v12 = vpop.permute.xlu1 %591 }
 0x14b   : > { %637 = vst.msk [vmem:[%s1342_s14 + $0x8] sm:$0xf] %vm570_vm1, %v592_v12 }
 0x14c   : > { %v588_v13 = vpop.permute.xlu0 %587 }
 0x14d   : > { %635 = vst.msk [vmem:[%s1342_s14] sm:$0xf] %vm570_vm1, %v588_v13 }
 0x14e   : > { %v608_v14 = vpop.permute.xlu1 %607 }
 0x14f   : > { %645 = vst.msk [vmem:[%s1342_s14 + $0x28] sm:$0xf] %vm570_vm1, %v608_v14 }
 0x150   : > { %v594_v15 = vpop.permute.xlu0 %593 }
 0x151   : > { %638 = vst.msk [vmem:[%s1342_s14 + $0xc] sm:$0xf] %vm570_vm1, %v594_v15 }
 0x152   : > { %v604_v16 = vpop.permute.xlu1 %603 }
 0x153   : > { %643 = vst.msk [vmem:[%s1342_s14 + $0x20] sm:$0xf] %vm570_vm1, %v604_v16 }
 0x154   : > { %v610_v17 = vpop.permute.xlu0 %609 }
 0x155   : > { %646 = vst.msk [vmem:[%s1342_s14 + $0x2c] sm:$0xf] %vm570_vm1, %v610_v17 }
 0x156   : > { %v729_v18 = vpop.permute.xlu1 %728 }
 0x157   : > { %774 = vst.msk [vmem:[%s1358_s17 + $0x8] sm:$0xf] %vm570_vm1, %v729_v18 }
 0x158   : > { %v606_v19 = vpop.permute.xlu0 %605 }
 0x159   : > { %644 = vst.msk [vmem:[%s1342_s14 + $0x24] sm:$0xf] %vm570_vm1, %v606_v19 }
 0x15a   : > { %v745_v20 = vpop.permute.xlu1 %744 }
 0x15b   : > { %782 = vst.msk [vmem:[%s1358_s17 + $0x28] sm:$0xf] %vm570_vm1, %v745_v20 }
 0x15c   : > { %v731_v21 = vpop.permute.xlu0 %730 }
 0x15d   : > { %775 = vst.msk [vmem:[%s1358_s17 + $0xc] sm:$0xf] %vm570_vm1, %v731_v21 }
 0x15e   : > { %v725_v22 = vpop.permute.xlu1 %724 }
 0x15f   : > { %772 = vst.msk [vmem:[%s1358_s17] sm:$0xf] %vm570_vm1, %v725_v22 }
 0x160   : > { %v747_v23 = vpop.permute.xlu0 %746 }
 0x161   : > { %783 = vst.msk [vmem:[%s1358_s17 + $0x2c] sm:$0xf] %vm570_vm1, %v747_v23 }
 0x162   : > { %v741_v24 = vpop.permute.xlu1 %740 }
 0x163   : > { %780 = vst.msk [vmem:[%s1358_s17 + $0x20] sm:$0xf] %vm570_vm1, %v741_v24 }
 0x164   : > { %v727_v25 = vpop.permute.xlu0 %726 }
 0x165   : > { %773 = vst.msk [vmem:[%s1358_s17 + $0x4] sm:$0xf] %vm570_vm1, %v727_v25 }
 0x166   : > { %v590_v26 = vpop.permute.xlu1 %589 }
 0x167   : > { %636 = vst.msk [vmem:[%s1342_s14 + $0x4] sm:$0xf] %vm570_vm1, %v590_v26 }
 0x168   : > { %v743_v27 = vpop.permute.xlu0 %742 }
 0x169   : > { %781 = vst.msk [vmem:[%s1358_s17 + $0x24] sm:$0xf] %vm570_vm1, %v743_v27 }
 0x16a   : > { %v600_v28 = vpop.permute.xlu1 %599 }
 0x16b   : > { %641 = vst.msk [vmem:[%s1342_s14 + $0x18] sm:$0xf] %vm570_vm1, %v600_v28 }
 0x16c   : > { %v602_v29 = vpop.permute.xlu0 %601 }
 0x16d   : > { %642 = vst.msk [vmem:[%s1342_s14 + $0x1c] sm:$0xf] %vm570_vm1, %v602_v29 }
 0x16e   : > { %v616_v30 = vpop.permute.xlu1 %615 }
 0x16f   : > { %649 = vst.msk [vmem:[%s1342_s14 + $0x38] sm:$0xf] %vm570_vm1, %v616_v30 }
 0x170   : > { %v618_v31 = vpop.permute.xlu0 %617 }
 0x171   : > { %650 = vst.msk [vmem:[%s1342_s14 + $0x3c] sm:$0xf] %vm570_vm1, %v618_v31 }
 0x172   : > { %v596_v32 = vpop.permute.xlu1 %595 }
 0x173   : > { %639 = vst.msk [vmem:[%s1342_s14 + $0x10] sm:$0xf] %vm570_vm1, %v596_v32 }
 0x174   : > { %v598_v33 = vpop.permute.xlu0 %597 }
 0x175   : > { %640 = vst.msk [vmem:[%s1342_s14 + $0x14] sm:$0xf] %vm570_vm1, %v598_v33 }
 0x176   : > { %v612_v34 = vpop.permute.xlu1 %611 }
 0x177   : > { %647 = vst.msk [vmem:[%s1342_s14 + $0x30] sm:$0xf] %vm570_vm1, %v612_v34 }
 0x178   : > { %v614_v35 = vpop.permute.xlu0 %613 }
 0x179   : > { %648 = vst.msk [vmem:[%s1342_s14 + $0x34] sm:$0xf] %vm570_vm1, %v614_v35 }
 0x17a   : > { %v737_v36 = vpop.permute.xlu1 %736 }
 0x17b   : > { %778 = vst.msk [vmem:[%s1358_s17 + $0x18] sm:$0xf] %vm570_vm1, %v737_v36 }
 0x17c   : > { %v739_v37 = vpop.permute.xlu0 %738 }
 0x17d   : > { %779 = vst.msk [vmem:[%s1358_s17 + $0x1c] sm:$0xf] %vm570_vm1, %v739_v37 }
 0x17e   : > { %v733_v38 = vpop.permute.xlu1 %732 }
 0x17f   : > { %776 = vst.msk [vmem:[%s1358_s17 + $0x10] sm:$0xf] %vm570_vm1, %v733_v38 }
 0x180   : > { %v735_v39 = vpop.permute.xlu0 %734 }
 0x181   : > { %777 = vst.msk [vmem:[%s1358_s17 + $0x14] sm:$0xf] %vm570_vm1, %v735_v39 }
 0x182   : > { %v749_v40 = vpop.permute.xlu1 %748 }
 0x183   : > { %784 = vst.msk [vmem:[%s1358_s17 + $0x30] sm:$0xf] %vm570_vm1, %v749_v40 }
 0x184   : > { %v751_v41 = vpop.permute.xlu0 %750 }
 0x185   : > { %785 = vst.msk [vmem:[%s1358_s17 + $0x34] sm:$0xf] %vm570_vm1, %v751_v41 }
 0x186   : > { %v753_v42 = vpop.permute.xlu1 %752 }
 0x187   : > { %786 = vst.msk [vmem:[%s1358_s17 + $0x38] sm:$0xf] %vm570_vm1, %v753_v42 }
 0x188   : > { %v755_v43 = vpop.permute.xlu0 %754 }
 0x189   : > { %787 = vst.msk [vmem:[%s1358_s17 + $0x3c] sm:$0xf] %vm570_vm1, %v755_v43 }
 0x18a PF: > { %s16_s20 = sadd.s32 1, %s1169_s20   ;;  %s1429_s18 = smov %s1165_s19 }
 0x18b   : > { %p13_p5 = scmp.ge.s32.totalorder %s16_s20, 4   ;;  %s1430_s19 = smov %s1432_s21 }
 0x18d   :  { %15 = sbr.rel (!%p13_p5) target bundleno = 2 (0x2), region = 86 }

// kernel: ssa_forward.3
= control target key start
LH: loop header
LB: loop body
LE: loop exit
PB: predicated region body
PF: predicated region fallthrough
CT: control target
= control target key end

     0   :  { %s1555_s18 = smov 0   ;;  %s1557_s19 = smov 0   ;;  %s1908_s0 = inlined_call_operand.vmem [shape: bf16[2,128,32], index: 0, kind: input, shape index: {}]   ;;  %s1909_s1 = inlined_call_operand.vmem [shape: bf16[2,128,32], index: 1, kind: input, shape index: {}]   ;;  %s1910_s2 = inlined_call_operand.vmem [shape: bf16[2,128,32], index: 2, kind: input, shape index: {}]   ;;  %s1911_s3 = inlined_call_operand.vmem [shape: s8[128,128], index: 3, kind: input, shape index: {}]   ;;  %s1912_s4 = inlined_call_operand.vmem [shape: f32[2,128,32], index: 4, kind: output, shape index: {0}]   ;;  %s1913_s5 = inlined_call_operand.vmem [shape: f32[2,128,128], index: 5, kind: output, shape index: {1}]  }
   0x1   :  { %s1559_s20 = smov 0  }
   0x2 LB: > { %s28_s21 = sadd.s32 1, %s1518_s19  ;;  %p1233_p0 = scmp.ge.s32.totalorder %s1522_s20, 1  ;;  %s1522_s20 = sphi %s1559_s20, %s16_s20   ;;  %s1518_s19 = sphi %s1557_s19, %s1915_s19   ;;  %s1514_s18 = sphi %s1555_s18, %s1914_s18  }
   0x3   : > { %p30_p1 = scmp.ge.s32.totalorder %s28_s21, 2  ;;  %p244_p2 = scmp.lt.s32.totalorder %s1522_s20, 3 }
   0x5   : > { %s1917_s21 = smov (%p30_p1, %s28_s21), 0  ;;  %p245_p3 = pnand %p1233_p0, %p244_p2 }
   0x6   : > { %p305_p4 = scmp.lt.s32.totalorder (!%p245_p3), %s1514_s18, 1 }
   0x7   : > { %248 = sbr.rel (%p245_p3) target bundleno = 822 (0x336), region = 36 }
   0xc   : > { %s1919_s18 = smov (!%p305_p4, %s1514_s18), 1  ;;  %vm465_vm0 = vcmask 261120   ;;  %v613_v24 = vld [vmem:[%s1911_s3 + $0x4] sm:$0x3]  ;;  %v611_v25 = vld [vmem:[%s1911_s3] sm:$0x3] }
   0xd   : > { %s1576_s22 = sshll.u32 %s1919_s18, 6  ;;  %vm629_vm1 = vnez %v613_v24  ;;  %v614_v26 = vld [vmem:[%s1911_s3 + $0x6] sm:$0x3]  ;;  %vm627_vm2 = vnez %v611_v25  ;;  %v1524_v27 = vmov 0   ;;  %v612_v29 = vld [vmem:[%s1911_s3 + $0x2] sm:$0x3] }
   0xe   : > { %s1582_s25 = scalar_lea.vmem %s1909_s1, %s1576_s22  ;;  %s1593_s28 = scalar_lea.vmem %s1908_s0, %s1576_s22  ;;  %v645_v28 = vsel %vm629_vm1, 16843009, %v1524_v27  ;;  %vm630_vm3 = vnez %v614_v26  ;;  %v643_v30 = vsel %vm627_vm2, 16843009, %v1524_v27  ;;  %vm628_vm4 = vnez %v612_v29  ;;  %v615_v33 = vld [vmem:[%s1911_s3 + $0x8] sm:$0x3] }
   0xf   : > { %v1412_v0 = vld [vmem:[%s1582_s25 + $0x38] sm:$0xff]   ;;  %v1413_v1 = vld [vmem:[%s1582_s25 + $0x30] sm:$0xff]   ;;  %v1414_v3 = vld [vmem:[%s1582_s25 + $0x28] sm:$0xff]   ;;  %v661_v31 = vunpack.c.0.s8 %v645_v28  ;;  %v646_v32 = vsel %vm630_vm3, 16843009, %v1524_v27  ;;  %v659_v34 = vunpack.c.0.s8 %v643_v30  ;;  %vm631_vm6 = vnez %v615_v33  ;;  %s1746_s23 = scalar_lea.vmem %s1910_s2, %s1576_s22  ;;  %s1281_s22 = sshll.u32 %s1919_s18, 7 }
  0x10   : > { %1379 = vmatprep.subr.msk.bf16.mxu0 %vm465_vm0, %v1412_v0  ;;  %v512_v2 = vsel %vm465_vm0, %v1412_v0, 0  ;;  %v509_v4 = vsel %vm465_vm0, %v1413_v1, 0  ;;  %v1420_v5 = vld [vmem:[%s1593_s28] sm:$0xff]   ;;  %v506_v6 = vsel %vm465_vm0, %v1414_v3, 0  ;;  %v1416_v9 = vld [vmem:[%s1582_s25 + $0x18] sm:$0xff]   ;;  %v1417_v11 = vld [vmem:[%s1582_s25 + $0x10] sm:$0xff]   ;;  %v662_v36 = vunpack.c.0.s8 %v646_v32  ;;  %s1826_s26 = scalar_lea.vmem %s1913_s5, %s1281_s22  ;;  %s1865_s29 = scalar_lea.vmem %s1912_s4, %s1281_s22 }
  0x11   : > { %1316 = vmatpush3.bf16.xpose.msra.mxu0 %v512_v2  ;;  %1331 = vmatprep.mubr.msk.bf16.mxu0 %vm465_vm0, %v1420_v5  ;;  %v1415_v7 = vld [vmem:[%s1582_s25 + $0x20] sm:$0xff]   ;;  %v500_v10 = vsel %vm465_vm0, %v1416_v9, 0  ;;  %v497_v12 = vsel %vm465_vm0, %v1417_v11, 0  ;;  %v1418_v13 = vld [vmem:[%s1582_s25 + $0x8] sm:$0xff]   ;;  %v1422_v18 = vld [vmem:[%s1593_s28 + $0x10] sm:$0xff]   ;;  %vm677_vm5 = vcmp.ne.s32.totalorder %v661_v31, 0 }
  0x12   : > { %1380 = vmatprep.subr.msk.bf16.mxu0 %vm465_vm0, %v1413_v1  ;;  %v503_v8 = vsel %vm465_vm0, %v1415_v7, 0  ;;  %v494_v14 = vsel %vm465_vm0, %v1418_v13, 0  ;;  %v1419_v15 = vld [vmem:[%s1582_s25] sm:$0xff]   ;;  %v1421_v17 = vld [vmem:[%s1593_s28 + $0x8] sm:$0xff]   ;;  %v1423_v19 = vld [vmem:[%s1593_s28 + $0x18] sm:$0xff]   ;;  %vm675_vm7 = vcmp.ne.s32.totalorder %v659_v34, 0 }
  0x13   : > { %v491_v16 = vsel %vm465_vm0, %v1419_v15, 0  ;;  %v1424_v20 = vld [vmem:[%s1593_s28 + $0x20] sm:$0xff]   ;;  %v1425_v21 = vld [vmem:[%s1593_s28 + $0x28] sm:$0xff]   ;;  %v1426_v22 = vld [vmem:[%s1593_s28 + $0x30] sm:$0xff]   ;;  %v644_v35 = vsel %vm628_vm4, 16843009, %v1524_v27 }
  0x14   : > { %v1427_v23 = vld [vmem:[%s1593_s28 + $0x38] sm:$0xff]   ;;  %v617_v37 = vld [vmem:[%s1911_s3 + $0xc] sm:$0x3]  ;;  %v616_v38 = vld [vmem:[%s1911_s3 + $0xa] sm:$0x3]  ;;  %v660_v40 = vunpack.c.0.s8 %v644_v35  ;;  %vm678_vm8 = vcmp.ne.s32.totalorder %v662_v36, 0 }
  0x15   : > { %v647_v42 = vsel %vm631_vm6, 16843009, %v1524_v27  ;;  %vm633_vm9 = vnez %v617_v37  ;;  %vm632_vm10 = vnez %v616_v38  ;;  %v618_v45 = vld [vmem:[%s1911_s3 + $0xe] sm:$0x3]  ;;  %v619_v46 = vld [vmem:[%s1911_s3 + $0x10] sm:$0x3] }
  0x16   : > { %vm676_vm11 = vcmp.ne.s32.totalorder %v660_v40, 0  ;;  %v663_v48 = vunpack.c.0.s8 %v647_v42  ;;  %v649_v50 = vsel %vm633_vm9, 16843009, %v1524_v27  ;;  %v648_v51 = vsel %vm632_vm10, 16843009, %v1524_v27  ;;  %v1428_v42 = vld [vmem:[%s1746_s23 + $0x38] sm:$0xff]  }
  0x17   : > { %vm634_vm12 = vnez %v618_v45  ;;  %vm635_vm13 = vnez %v619_v46  ;;  %v621_v54 = vld [vmem:[%s1911_s3 + $0x14] sm:$0x3]  ;;  %v620_v55 = vld [vmem:[%s1911_s3 + $0x12] sm:$0x3]  ;;  %v665_v57 = vunpack.c.0.s8 %v649_v50  ;;  %v664_v58 = vunpack.c.0.s8 %v648_v51  ;;  %v622_v63 = vld [vmem:[%s1911_s3 + $0x16] sm:$0x3]  ;;  %1347 = vmatprep.subr.bf16.mxu1 %v1428_v42 }
  0x18   : > { %vm679_vm14 = vcmp.ne.s32.totalorder %v663_v48, 0  ;;  %v650_v59 = vsel %vm634_vm12, 16843009, %v1524_v27  ;;  %v651_v60 = vsel %vm635_vm13, 16843009, %v1524_v27  ;;  %vm637_vm15 = vnez %v621_v54  ;;  %1348 = vmatpush3.bf16.msra.mxu1 %v1428_v42 }
  0x19   : > { %1318 = vmatpush3.bf16.xpose.msra.mxu0 %v509_v4  ;;  %vm636_vm1 = vnez %v620_v55  ;;  %v623_v0 = vld [vmem:[%s1911_s3 + $0x18] sm:$0x3]  ;;  %vm681_vm2 = vcmp.ne.s32.totalorder %v665_v57, 0  ;;  %vm680_vm3 = vcmp.ne.s32.totalorder %v664_v58, 0  ;;  %v666_v2 = vunpack.c.0.s8 %v650_v59 }
  0x1a   : > { %1381 = vmatprep.subr.msk.bf16.mxu0 %vm465_vm0, %v1414_v3  ;;  %v667_v3 = vunpack.c.0.s8 %v651_v60  ;;  %v653_v4 = vsel %vm637_vm15, 16843009, %v1524_v27  ;;  %v652_v5 = vsel %vm636_vm1, 16843009, %v1524_v27  ;;  %vm638_vm4 = vnez %v622_v63 }
  0x1b   : > { %vm682_vm6 = vcmp.ne.s32.totalorder %v666_v2, 0 }
  0x21   : > { %1320 = vmatpush3.bf16.xpose.msra.mxu0 %v506_v6 }
  0x22   : > { %1382 = vmatprep.subr.msk.bf16.mxu0 %vm465_vm0, %v1415_v7  ;;  %v625_v7 = vld [vmem:[%s1911_s3 + $0x1c] sm:$0x3] }
  0x29   : > { %1322 = vmatpush3.bf16.xpose.msra.mxu0 %v503_v8 }
  0x2a   : > { %1383 = vmatprep.subr.msk.bf16.mxu0 %vm465_vm0, %v1416_v9 }
  0x31   : > { %1324 = vmatpush3.bf16.xpose.msra.mxu0 %v500_v10  ;;  %v624_v10 = vld [vmem:[%s1911_s3 + $0x1a] sm:$0x3] }
  0x32   : > { %1384 = vmatprep.subr.msk.bf16.mxu0 %vm465_vm0, %v1417_v11  ;;  %vm640_vm9 = vnez %v624_v10 }
  0x33   : > { %v656_v24 = vsel %vm640_vm9, 16843009, %v1524_v27 }
  0x34   : > { %v672_v31 = vunpack.c.0.s8 %v656_v24 }
  0x36   : > { %vm688_vm1 = vcmp.ne.s32.totalorder %v672_v31, 0 }
  0x39   : > { %1326 = vmatpush3.bf16.xpose.msra.mxu0 %v497_v12  ;;  %v669_v12 = vunpack.c.0.s8 %v653_v4 }
  0x3a   : > { %1385 = vmatprep.subr.msk.bf16.mxu0 %vm465_vm0, %v1418_v13  ;;  %v668_v13 = vunpack.c.0.s8 %v652_v5 }
  0x3b   : > { %vm685_vm10 = vcmp.ne.s32.totalorder %v669_v12, 0 }
  0x41   : > { %1328 = vmatpush3.bf16.xpose.msra.mxu0 %v494_v14  ;;  %v654_v14 = vsel %vm638_vm4, 16843009, %v1524_v27 }
  0x42   : > { %1386 = vmatprep.subr.msk.bf16.mxu0 %vm465_vm0, %v1419_v15 }
  0x49   : > { %1330 = vmatpush3.bf16.xpose.msra.mxu0 %v491_v16 }
  0x50   : > { %1332 = vmatmul.mubr.msk.bf16.vlgmr.msra.gmra.mxu0 %vm465_vm0, %v1421_v17 }
  0x51   : > { %1335 = vmatprep.mubr.msk.bf16.mxu0 %vm465_vm0, %v1422_v18 }
  0x58   : > { %1336 = vmatmul.mubr.msk.bf16.gmra.mxu0 %vm465_vm0, %v1423_v19  ;;  %v626_v19 = vld [vmem:[%s1911_s3 + $0x1e] sm:$0x3] }
  0x59   : > { %1339 = vmatprep.mubr.msk.bf16.mxu0 %vm465_vm0, %v1424_v20  ;;  %vm642_vm12 = vnez %v626_v19 }
  0x5a   : > { %v658_v32 = vsel %vm642_vm12, 16843009, %v1524_v27 }
  0x5b   : > { %v674_v37 = vunpack.c.0.s8 %v658_v32 }
  0x60   : > { %1340 = vmatmul.mubr.msk.bf16.gmra.mxu0 %vm465_vm0, %v1425_v21  ;;  %v670_v21 = vunpack.c.0.s8 %v654_v14 }
  0x61   : > { %1343 = vmatprep.mubr.msk.bf16.mxu0 %vm465_vm0, %v1426_v22 }
  0x62   : > { %vm686_vm13 = vcmp.ne.s32.totalorder %v670_v21, 0 }
  0x68   : > { %1344 = vmatmul.mubr.msk.bf16.gmra.mxu0 %vm465_vm0, %v1427_v23 }
 0x110   : > { %v1333_v39 = vpop.f32.mrf.mxu0 }
 0x111   : > { %v1655_v41 = vsel %vm677_vm5, %v1333_v39, -1e+10  ;;  %vm639_vm5 = vnez %v623_v0 }
 0x112   : > { %711 = vmax.xlane.f32.xlu1 %v1655_v41  ;;  %v548_v43 = vpop.f32.mrf.mxu0  ;;  %v655_v15 = vsel %vm639_vm5, 16843009, %v1524_v27 }
 0x113   : > { %v1659_v44 = vsel %vm675_vm7, %v548_v43, -1e+10  ;;  %vm683_vm7 = vcmp.ne.s32.totalorder %v667_v3, 0  ;;  %v671_v22 = vunpack.c.0.s8 %v655_v15  ;;  %v1429_v43 = vld [vmem:[%s1746_s23 + $0x30] sm:$0xff]  }
 0x114   : > { %707 = vmax.xlane.f32.xlu0 %v1659_v44  ;;  %v1334_v47 = vpop.f32.mrf.mxu0  ;;  %1349 = vmatprep.subr.bf16.mxu1 %v1429_v43 }
 0x115   : > { %v1668_v49 = vsel %vm678_vm8, %v1334_v47, -1e+10  ;;  %vm641_vm8 = vnez %v625_v7  ;;  %1350 = vmatpush3.bf16.msra.mxu1 %v1429_v43  ;;  %v1433_v43 = vld [vmem:[%s1746_s23 + $0x10] sm:$0xff]  }
 0x116   : > { %713 = vmax.xlane.f32.xlu1 %v1668_v49  ;;  %v551_v52 = vpop.f32.mrf.mxu0  ;;  %v657_v23 = vsel %vm641_vm8, 16843009, %v1524_v27 }
 0x117   : > { %v1673_v53 = vsel %vm676_vm11, %v551_v52, -1e+10  ;;  %vm684_vm11 = vcmp.ne.s32.totalorder %v668_v13, 0  ;;  %v673_v30 = vunpack.c.0.s8 %v657_v23 }
 0x118   : > { %709 = vmax.xlane.f32.xlu0 %v1673_v53  ;;  %v1337_v56 = vpop.f32.mrf.mxu0 }
 0x119   : > { %v1698_v8 = vsel %vm681_vm2, %v1337_v56, -1e+10  ;;  %vm689_vm15 = vcmp.ne.s32.totalorder %v673_v30, 0  ;;  %vm690_vm2 = vcmp.ne.s32.totalorder %v674_v37, 0 }
 0x11a   : > { %v564_v61 = vpop.f32.mrf.mxu0 }
 0x11b   : > { %v1684_v62 = vsel %vm679_vm14, %v564_v61, -1e+10  ;;  %vm687_vm14 = vcmp.ne.s32.totalorder %v671_v22, 0 }
 0x11c   : > { %715 = vmax.xlane.f32.xlu0 %v1684_v62  ;;  %v1338_v1 = vpop.f32.mrf.mxu0 }
 0x11d   : > { %v1709_v17 = vsel %vm682_vm6, %v1338_v1, -1e+10 }
 0x11e   : > { %v567_v6 = vpop.f32.mrf.mxu0 }
 0x11f   : > { %v1700_v9 = vsel %vm680_vm3, %v567_v6, -1e+10 }
 0x120   : > { %719 = vmax.xlane.f32.xlu0 %v1698_v8  ;;  %717 = vmax.xlane.f32.xlu1 %v1700_v9  ;;  %v1341_v11 = vpop.f32.mrf.mxu0 }
 0x121   : > { %v1720_v26 = vsel %vm685_vm10, %v1341_v11, -1e+10 }
 0x122   : > { %v580_v16 = vpop.f32.mrf.mxu0 }
 0x123   : > { %v1711_v18 = vsel %vm683_vm7, %v580_v16, -1e+10 }
 0x124   : > { %721 = vmax.xlane.f32.xlu1 %v1709_v17  ;;  %723 = vmax.xlane.f32.xlu0 %v1711_v18  ;;  %v1342_v20 = vpop.f32.mrf.mxu0 }
 0x125   : > { %v1727_v34 = vsel %vm686_vm13, %v1342_v20, -1e+10 }
 0x126   : > { %v583_v25 = vpop.f32.mrf.mxu0 }
 0x127   : > { %v1722_v28 = vsel %vm684_vm11, %v583_v25, -1e+10 }
 0x128   : > { %727 = vmax.xlane.f32.xlu0 %v1720_v26  ;;  %725 = vmax.xlane.f32.xlu1 %v1722_v28  ;;  %v1345_v29 = vpop.f32.mrf.mxu0 }
 0x129   : > { %v1733_v39 = vsel %vm689_vm15, %v1345_v29, -1e+10 }
 0x12a   : > { %v596_v33 = vpop.f32.mrf.mxu0 }
 0x12b   : > { %v1729_v35 = vsel %vm687_vm14, %v596_v33, -1e+10 }
 0x12c   : > { %729 = vmax.xlane.f32.xlu1 %v1727_v34  ;;  %731 = vmax.xlane.f32.xlu0 %v1729_v35  ;;  %v1346_v36 = vpop.f32.mrf.mxu0 }
 0x12d   : > { %v1739_v27 = vsel %vm690_vm2, %v1346_v36, -1e+10  ;;  %v1431_v36 = vld [vmem:[%s1746_s23 + $0x20] sm:$0xff]  }
 0x12e   : > { %v599_v38 = vpop.f32.mrf.mxu0 }
 0x12f   : > { %v1735_v40 = vsel %vm688_vm1, %v599_v38, -1e+10 }
 0x130   : > { %735 = vmax.xlane.f32.xlu0 %v1733_v39  ;;  %733 = vmax.xlane.f32.xlu1 %v1735_v40 }
 0x134   : > { %737 = vmax.xlane.f32.xlu1 %v1739_v27 }
 0x19b   : > { %v712_v45 = vpop.xlane.xlu1 %711 }
 0x19c   : > { %v741_v46 = vsub.f32 %v1655_v41, %v712_v45 }
 0x19d   : > { %v708_v47 = vpop.xlane.xlu0 %707 }
 0x19e   : > { %v739_v48 = vsub.f32 %v1659_v44, %v708_v47  ;;  %v759_v52 = vmul.f32 1.442695, %v741_v46 }
 0x19f   : > { %v714_v50 = vpop.xlane.xlu1 %713 }
 0x1a0   : > { %v755_v51 = vmul.f32 1.442695, %v739_v48  ;;  %v742_v54 = vsub.f32 %v1668_v49, %v714_v50  ;;  %v1434_v48 = vld [vmem:[%s1746_s23 + $0x8] sm:$0xff]  }
 0x1a1   : > { %v710_v55 = vpop.xlane.xlu0 %709 }
 0x1a2   : > { %1436 = vpow2.f32 %v755_v51  ;;  %v740_v56 = vsub.f32 %v1673_v53, %v710_v55  ;;  %v761_v58 = vmul.f32 1.442695, %v742_v54  ;;  %v1435_v51 = vld [vmem:[%s1746_s23] sm:$0xff]  }
 0x1a3   : > { %1438 = vpow2.f32 %v759_v52 }
 0x1a4   : > { %v757_v57 = vmul.f32 1.442695, %v740_v56 }
 0x1a5   : > { %v716_v59 = vpop.xlane.xlu0 %715 }
 0x1a6   : > { %1440 = vpow2.f32 %v757_v57  ;;  %v743_v60 = vsub.f32 %v1684_v62, %v716_v59 }
 0x1a7   : > { %1442 = vpow2.f32 %v761_v58 }
 0x1a8   : > { %v763_v41 = vmul.f32 1.442695, %v743_v60 }
 0x1a9   : > { %v720_v61 = vpop.xlane.xlu0 %719  ;;  %v718_v44 = vpop.xlane.xlu1 %717 }
 0x1aa   : > { %1444 = vpow2.f32 %v763_v41  ;;  %v745_v63 = vsub.f32 %v1698_v8, %v720_v61  ;;  %v744_v49 = vsub.f32 %v1700_v9, %v718_v44 }
 0x1ac   : > { %v767_v0 = vmul.f32 1.442695, %v745_v63  ;;  %v765_v1 = vmul.f32 1.442695, %v744_v49 }
 0x1ad   : > { %v722_v2 = vpop.xlane.xlu1 %721  ;;  %v724_v53 = vpop.xlane.xlu0 %723 }
 0x1ae   : > { %1446 = vpow2.f32 %v767_v0  ;;  %v746_v3 = vsub.f32 %v1709_v17, %v722_v2  ;;  %v747_v4 = vsub.f32 %v1711_v18, %v724_v53 }
 0x1af   : > { %v1759_v5 = vpop.eup %1436  ;;  %1448 = vpow2.f32 %v765_v1 }
 0x1b0   : > { %v769_v62 = vmul.f32 1.442695, %v746_v3  ;;  %v771_v6 = vmul.f32 1.442695, %v747_v4  ;;  %787 = vadd.xlane.f32.xlu0 %v1759_v5  ;;  %v1762_v10 = vpop.eup %1438 }
 0x1b1   : > { %v728_v7 = vpop.xlane.xlu0 %727  ;;  %v726_v8 = vpop.xlane.xlu1 %725 }
 0x1b2   : > { %1450 = vpow2.f32 %v769_v62  ;;  %v749_v9 = vsub.f32 %v1720_v26, %v728_v7  ;;  %v748_v11 = vsub.f32 %v1722_v28, %v726_v8  ;;  %v1430_v28 = vld [vmem:[%s1746_s23 + $0x28] sm:$0xff]  }
 0x1b3   : > { %v1766_v12 = vpop.eup %1440  ;;  %1452 = vpow2.f32 %v771_v6  ;;  %1351 = vmatprep.subr.bf16.mxu1 %v1430_v28 }
 0x1b4   : > { %v775_v13 = vmul.f32 1.442695, %v749_v9  ;;  %v773_v14 = vmul.f32 1.442695, %v748_v11  ;;  %791 = vadd.xlane.f32.xlu0 %v1762_v10  ;;  %789 = vadd.xlane.f32.xlu1 %v1766_v12  ;;  %v1770_v17 = vpop.eup %1442 }
 0x1b5   : > { %v730_v15 = vpop.xlane.xlu1 %729  ;;  %v732_v16 = vpop.xlane.xlu0 %731  ;;  %1352 = vmatpush3.bf16.msra.mxu1 %v1430_v28 }
 0x1b6   : > { %1454 = vpow2.f32 %v775_v13  ;;  %v750_v18 = vsub.f32 %v1727_v34, %v730_v15  ;;  %v751_v19 = vsub.f32 %v1729_v35, %v732_v16  ;;  %1353 = vmatprep.subr.bf16.mxu1 %v1431_v36 }
 0x1b7   : > { %v1774_v20 = vpop.eup %1444  ;;  %1456 = vpow2.f32 %v773_v14 }
 0x1b8   : > { %v777_v21 = vmul.f32 1.442695, %v750_v18  ;;  %v779_v22 = vmul.f32 1.442695, %v751_v19  ;;  %795 = vadd.xlane.f32.xlu0 %v1774_v20  ;;  %793 = vadd.xlane.f32.xlu1 %v1770_v17 }
 0x1b9   : > { %v736_v23 = vpop.xlane.xlu0 %735  ;;  %v734_v24 = vpop.xlane.xlu1 %733  ;;  %1354 = vmatpush3.bf16.msra.mxu1 %v1431_v36 }
 0x1ba   : > { %1458 = vpow2.f32 %v777_v21  ;;  %v753_v25 = vsub.f32 %v1733_v39, %v736_v23  ;;  %v752_v26 = vsub.f32 %v1735_v40, %v734_v24  ;;  %v1432_v40 = vld [vmem:[%s1746_s23 + $0x18] sm:$0xff]  }
 0x1bb   : > { %v1781_v29 = vpop.eup %1446  ;;  %1460 = vpow2.f32 %v779_v22  ;;  %1355 = vmatprep.subr.bf16.mxu1 %v1432_v40 }
 0x1bc   : > { %v1783_v30 = vpop.eup %1448  ;;  %v783_v31 = vmul.f32 1.442695, %v753_v25  ;;  %v781_v32 = vmul.f32 1.442695, %v752_v26  ;;  %799 = vadd.xlane.f32.xlu0 %v1781_v29 }
 0x1bd   : > { %797 = vadd.xlane.f32.xlu1 %v1783_v30  ;;  %v738_v33 = vpop.xlane.xlu1 %737  ;;  %1356 = vmatpush3.bf16.msra.mxu1 %v1432_v40 }
 0x1be   : > { %1462 = vpow2.f32 %v783_v31  ;;  %v754_v34 = vsub.f32 %v1739_v27, %v738_v33  ;;  %1357 = vmatprep.subr.bf16.mxu1 %v1433_v43 }
 0x1bf   : > { %v1788_v35 = vpop.eup %1450  ;;  %1464 = vpow2.f32 %v781_v32 }
 0x1c0   : > { %v1791_v37 = vpop.eup %1452  ;;  %v785_v38 = vmul.f32 1.442695, %v754_v34 }
 0x1c1   : > { %803 = vadd.xlane.f32.xlu0 %v1791_v37  ;;  %801 = vadd.xlane.f32.xlu1 %v1788_v35 }
 0x1c2   : > { %1466 = vpow2.f32 %v785_v38  ;;  %1358 = vmatpush3.bf16.msra.mxu1 %v1433_v43 }
 0x1c3   : > { %v1795_v39 = vpop.eup %1454  ;;  %1359 = vmatprep.subr.bf16.mxu1 %v1434_v48 }
 0x1c4   : > { %v1798_v27 = vpop.eup %1456 }
 0x1c5   : > { %807 = vadd.xlane.f32.xlu0 %v1795_v39  ;;  %805 = vadd.xlane.f32.xlu1 %v1798_v27 }
 0x1c6   : > { %1360 = vmatpush3.bf16.msra.mxu1 %v1434_v48 }
 0x1c7   : > { %v1802_v42 = vpop.eup %1458  ;;  %1361 = vmatprep.subr.bf16.mxu1 %v1435_v51 }
 0x1c8   : > { %v1805_v45 = vpop.eup %1460 }
 0x1c9   : > { %811 = vadd.xlane.f32.xlu0 %v1805_v45  ;;  %809 = vadd.xlane.f32.xlu1 %v1802_v42 }
 0x1ca   : > { %1362 = vmatpush3.bf16.msra.mxu1 %v1435_v51 }
 0x1cb   : > { %v1809_v46 = vpop.eup %1462 }
 0x1cc   : > { %v1811_v47 = vpop.eup %1464 }
 0x1cd   : > { %815 = vadd.xlane.f32.xlu0 %v1809_v46  ;;  %813 = vadd.xlane.f32.xlu1 %v1811_v47 }
 0x1cf   : > { %v1816_v50 = vpop.eup %1466 }
 0x1d1   : > { %817 = vadd.xlane.f32.xlu1 %v1816_v50 }
 0x239   : > { %v788_v52 = vpop.xlane.xlu0 %787 }
 0x23a   : > { %1468 = vrcp.f32 %v788_v52 }
 0x23d   : > { %v792_v54 = vpop.xlane.xlu0 %791  ;;  %v790_v55 = vpop.xlane.xlu1 %789 }
 0x23e   : > { %1470 = vrcp.f32 %v792_v54 }
 0x23f   : > { %1472 = vrcp.f32 %v790_v55 }
 0x241   : > { %v796_v56 = vpop.xlane.xlu0 %795  ;;  %v794_v57 = vpop.xlane.xlu1 %793 }
 0x242   : > { %1474 = vrcp.f32 %v796_v56 }
 0x243   : > { %1476 = vrcp.f32 %v794_v57 }
 0x245   : > { %v800_v58 = vpop.xlane.xlu0 %799 }
 0x246   : > { %1478 = vrcp.f32 %v800_v58  ;;  %v798_v59 = vpop.xlane.xlu1 %797 }
 0x247   : > { %v1469_v60 = vpop.eup %1468  ;;  %1480 = vrcp.f32 %v798_v59 }
 0x248   : > { %v835_v41 = vmul.f32 %v1469_v60, %v1759_v5 }
 0x24a   : > { %v804_v61 = vpop.xlane.xlu0 %803  ;;  %v802_v44 = vpop.xlane.xlu1 %801  ;;  %851 = vst [vmem:[%s1826_s26] sm:$0xff] %v835_v41 }
 0x24b   : > { %v1471_v63 = vpop.eup %1470  ;;  %1482 = vrcp.f32 %v804_v61 }
 0x24c   : > { %v1473_v49 = vpop.eup %1472  ;;  %1484 = vrcp.f32 %v802_v44  ;;  %v837_v0 = vmul.f32 %v1471_v63, %v1762_v10 }
 0x24d   : > { %v836_v1 = vmul.f32 %v1473_v49, %v1766_v12 }
 0x24e   : > { %v808_v2 = vpop.xlane.xlu0 %807  ;;  %v806_v53 = vpop.xlane.xlu1 %805  ;;  %853 = vst [vmem:[%s1826_s26 + $0x10] sm:$0xff] %v837_v0 }
 0x24f   : > { %v1475_v3 = vpop.eup %1474  ;;  %1486 = vrcp.f32 %v808_v2  ;;  %852 = vst [vmem:[%s1826_s26 + $0x8] sm:$0xff] %v836_v1  ;;  %v867_v4 = vpack.c.bf16 %v836_v1, %v835_v41 }
 0x250   : > { %v1477_v5 = vpop.eup %1476  ;;  %1488 = vrcp.f32 %v806_v53  ;;  %v839_v62 = vmul.f32 %v1475_v3, %v1774_v20 }
 0x251   : > { %1363 = vmatprep.mubr.bf16.mxu1 %v867_v4  ;;  %v838_v6 = vmul.f32 %v1477_v5, %v1770_v17 }
 0x252   : > { %v812_v7 = vpop.xlane.xlu0 %811  ;;  %v810_v8 = vpop.xlane.xlu1 %809  ;;  %855 = vst [vmem:[%s1826_s26 + $0x20] sm:$0xff] %v839_v62 }
 0x253   : > { %v1479_v10 = vpop.eup %1478  ;;  %1490 = vrcp.f32 %v812_v7  ;;  %854 = vst [vmem:[%s1826_s26 + $0x18] sm:$0xff] %v838_v6  ;;  %v868_v9 = vpack.c.bf16 %v838_v6, %v837_v0 }
 0x254   : > { %v1481_v11 = vpop.eup %1480  ;;  %1492 = vrcp.f32 %v810_v8  ;;  %v841_v12 = vmul.f32 %v1479_v10, %v1781_v29 }
 0x255   : > { %1364 = vmatmul.mubr.bf16.vlgmr.msra.gmra.mxu1 %v868_v9  ;;  %v840_v13 = vmul.f32 %v1481_v11, %v1783_v30 }
 0x256   : > { %v816_v14 = vpop.xlane.xlu0 %815  ;;  %v814_v15 = vpop.xlane.xlu1 %813  ;;  %857 = vst [vmem:[%s1826_s26 + $0x30] sm:$0xff] %v841_v12 }
 0x257   : > { %1494 = vrcp.f32 %v816_v14  ;;  %856 = vst [vmem:[%s1826_s26 + $0x28] sm:$0xff] %v840_v13  ;;  %v869_v16 = vpack.c.bf16 %v840_v13, %v839_v62 }
 0x258   : > { %v1483_v17 = vpop.eup %1482  ;;  %1496 = vrcp.f32 %v814_v15 }
 0x259   : > { %v1485_v18 = vpop.eup %1484  ;;  %1367 = vmatprep.mubr.bf16.mxu1 %v869_v16  ;;  %v843_v19 = vmul.f32 %v1483_v17, %v1791_v37 }
 0x25a   : > { %v818_v20 = vpop.xlane.xlu1 %817  ;;  %v842_v21 = vmul.f32 %v1485_v18, %v1788_v35 }
 0x25b   : > { %1498 = vrcp.f32 %v818_v20  ;;  %859 = vst [vmem:[%s1826_s26 + $0x40] sm:$0xff] %v843_v19 }
 0x25c   : > { %v1487_v22 = vpop.eup %1486  ;;  %858 = vst [vmem:[%s1826_s26 + $0x38] sm:$0xff] %v842_v21  ;;  %v870_v23 = vpack.c.bf16 %v842_v21, %v841_v12 }
 0x25d   : > { %v1489_v24 = vpop.eup %1488  ;;  %v845_v25 = vmul.f32 %v1487_v22, %v1795_v39 }
 0x25e   : > { %1368 = vmatmul.mubr.bf16.gmra.mxu1 %v870_v23  ;;  %v844_v26 = vmul.f32 %v1489_v24, %v1798_v27 }
 0x25f   : > { %861 = vst [vmem:[%s1826_s26 + $0x50] sm:$0xff] %v845_v25 }
 0x260   : > { %v1491_v28 = vpop.eup %1490  ;;  %860 = vst [vmem:[%s1826_s26 + $0x48] sm:$0xff] %v844_v26  ;;  %v871_v29 = vpack.c.bf16 %v844_v26, %v843_v19 }
 0x261   : > { %v1493_v30 = vpop.eup %1492  ;;  %v847_v31 = vmul.f32 %v1491_v28, %v1805_v45 }
 0x262   : > { %1371 = vmatprep.mubr.bf16.mxu1 %v871_v29  ;;  %v846_v32 = vmul.f32 %v1493_v30, %v1802_v42 }
 0x263   : > { %863 = vst [vmem:[%s1826_s26 + $0x60] sm:$0xff] %v847_v31 }
 0x264   : > { %v1495_v33 = vpop.eup %1494  ;;  %862 = vst [vmem:[%s1826_s26 + $0x58] sm:$0xff] %v846_v32  ;;  %v872_v34 = vpack.c.bf16 %v846_v32, %v845_v25 }
 0x265   : > { %v1497_v35 = vpop.eup %1496  ;;  %v849_v36 = vmul.f32 %v1495_v33, %v1809_v46 }
 0x266   : > { %1372 = vmatmul.mubr.bf16.gmra.mxu1 %v872_v34  ;;  %v848_v37 = vmul.f32 %v1497_v35, %v1811_v47 }
 0x267   : > { %865 = vst [vmem:[%s1826_s26 + $0x70] sm:$0xff] %v849_v36 }
 0x268   : > { %v1499_v38 = vpop.eup %1498  ;;  %864 = vst [vmem:[%s1826_s26 + $0x68] sm:$0xff] %v848_v37  ;;  %v873_v39 = vpack.c.bf16 %v848_v37, %v847_v31 }
 0x269   : > { %v850_v40 = vmul.f32 %v1499_v38, %v1816_v50 }
 0x26a   : > { %1375 = vmatprep.mubr.bf16.mxu1 %v873_v39 }
 0x26b   : > { %866 = vst [vmem:[%s1826_s26 + $0x78] sm:$0xff] %v850_v40  ;;  %v874_v27 = vpack.c.bf16 %v850_v40, %v849_v36 }
 0x26e   : > { %1376 = vmatmul.mubr.bf16.gmra.mxu1 %v874_v27 }
 0x315   : > { %v1365_v42 = vpop.f32.mrf.mxu1 }
 0x316   : > { %1038 = vst.msk [vmem:[%s1865_s29 + $0x10] sm:$0xff] %vm465_vm0, %v1365_v42 }
 0x317   : > { %v973_v43 = vpop.f32.mrf.mxu1 }
 0x318   : > { %1036 = vst.msk [vmem:[%s1865_s29] sm:$0xff] %vm465_vm0, %v973_v43 }
 0x319   : > { %v1366_v45 = vpop.f32.mrf.mxu1 }
 0x31a   : > { %1039 = vst.msk [vmem:[%s1865_s29 + $0x18] sm:$0xff] %vm465_vm0, %v1366_v45 }
 0x31b   : > { %v976_v46 = vpop.f32.mrf.mxu1 }
 0x31c   : > { %1037 = vst.msk [vmem:[%s1865_s29 + $0x8] sm:$0xff] %vm465_vm0, %v976_v46 }
 0x31e   : > { %v1369_v47 = vpop.f32.mrf.mxu1 }
 0x31f   : > { %1042 = vst.msk [vmem:[%s1865_s29 + $0x30] sm:$0xff] %vm465_vm0, %v1369_v47 }
 0x320   : > { %v989_v48 = vpop.f32.mrf.mxu1 }
 0x321   : > { %1040 = vst.msk [vmem:[%s1865_s29 + $0x20] sm:$0xff] %vm465_vm0, %v989_v48 }
 0x322   : > { %v1370_v50 = vpop.f32.mrf.mxu1 }
 0x323   : > { %1043 = vst.msk [vmem:[%s1865_s29 + $0x38] sm:$0xff] %vm465_vm0, %v1370_v50 }
 0x324   : > { %v992_v51 = vpop.f32.mrf.mxu1 }
 0x325   : > { %1041 = vst.msk [vmem:[%s1865_s29 + $0x28] sm:$0xff] %vm465_vm0, %v992_v51 }
 0x326   : > { %v1373_v52 = vpop.f32.mrf.mxu1 }
 0x327   : > { %1046 = vst.msk [vmem:[%s1865_s29 + $0x50] sm:$0xff] %vm465_vm0, %v1373_v52 }
 0x328   : > { %v1005_v54 = vpop.f32.mrf.mxu1 }
 0x329   : > { %1044 = vst.msk [vmem:[%s1865_s29 + $0x40] sm:$0xff] %vm465_vm0, %v1005_v54 }
 0x32a   : > { %v1374_v55 = vpop.f32.mrf.mxu1 }
 0x32b   : > { %1047 = vst.msk [vmem:[%s1865_s29 + $0x58] sm:$0xff] %vm465_vm0, %v1374_v55 }
 0x32c   : > { %v1008_v56 = vpop.f32.mrf.mxu1 }
 0x32d   : > { %1045 = vst.msk [vmem:[%s1865_s29 + $0x48] sm:$0xff] %vm465_vm0, %v1008_v56 }
 0x32e   : > { %v1377_v57 = vpop.f32.mrf.mxu1 }
 0x32f   : > { %1050 = vst.msk [vmem:[%s1865_s29 + $0x70] sm:$0xff] %vm465_vm0, %v1377_v57 }
 0x330   : > { %v1021_v58 = vpop.f32.mrf.mxu1 }
 0x331   : > { %1048 = vst.msk [vmem:[%s1865_s29 + $0x60] sm:$0xff] %vm465_vm0, %v1021_v58 }
 0x332   : > { %v1378_v59 = vpop.f32.mrf.mxu1 }
 0x333   : > { %1051 = vst.msk [vmem:[%s1865_s29 + $0x78] sm:$0xff] %vm465_vm0, %v1378_v59 }
 0x334   : > { %v1024_v60 = vpop.f32.mrf.mxu1 }
 0x335   : > { %1049 = vst.msk [vmem:[%s1865_s29 + $0x68] sm:$0xff] %vm465_vm0, %v1024_v60 }
 0x336 PF: > { %s16_s20 = sadd.s32 1, %s1522_s20   ;;  %s1914_s18 = smov %s1518_s19 }
 0x337   : > { %p13_p5 = scmp.ge.s32.totalorder %s16_s20, 4   ;;  %s1915_s19 = smov %s1917_s21 }
 0x339   :  { %15 = sbr.rel (!%p13_p5) target bundleno = 2 (0x2), region = 87 }

</bundles_post_ra>
